<compile_context>
chip_gen: v7x
topology: tpu7x:2x2x1
jax: 0.10.0
libtpu: 0.0.40
codegen_flags: <defaults>
</compile_context>

<pallas_src>
import functools

import jax
import jax.numpy as jnp
from jax.experimental import pallas as pl
from jax.experimental.pallas import tpu as pltpu

LANE = 128
MAX_BLOCK_ROWS = 4096  # 4096 x 128 f32 = 2 MiB per input per pipeline buffer


def _round_up(x, m):
    return ((x + m - 1) // m) * m


def _huber_partial_sums_kernel(yh_ref, y_ref, sumsq_ref, sumabs_ref, *,
                               total_rows, block_rows, steps_per_shard,
                               needs_tail_mask):
    c = pl.program_id(0)          # shard (TensorCore) axis, "parallel"
    i = pl.program_id(1)          # reduction axis, "arbitrary"

    # Zero this shard's resident (1, 8, 128) output accumulators once.
    @pl.when(i == 0)
    def _():
        sumsq_ref[...] = jnp.zeros_like(sumsq_ref)
        sumabs_ref[...] = jnp.zeros_like(sumabs_ref)

    # Cast inside the kernel: bf16/f16 on the wire, f32 in compute.
    d = yh_ref[...].astype(jnp.float32) - y_ref[...].astype(jnp.float32)

    def accumulate(dv):
        # (block_rows, 128) -> (block_rows//8, 8, 128); sum over axis 0 is a
        # pure VPU add tree (no cross-lane/XLU work), result is one (8, 128)
        # vreg-sized partial added into the small resident accumulator.
        dv3 = dv.reshape(block_rows // 8, 8, LANE)
        sumsq_ref[0] += jnp.sum(dv3 * dv3, axis=0)
        sumabs_ref[0] += jnp.sum(jnp.abs(dv3), axis=0)

    if needs_tail_mask:
        # Only the block(s) overhanging `total_rows` pay the mask; every other
        # step takes the unmasked fast path.
        blk = c * steps_per_shard + i          # nominal (unclamped) block id
        row0 = blk * block_rows
        is_tail = row0 + block_rows > total_rows

        @pl.when(jnp.logical_not(is_tail))
        def _():
            accumulate(d)

        @pl.when(is_tail)
        def _():
            # Out-of-bounds rows hold unspecified data; jnp.where fully
            # replaces them so even NaN garbage cannot leak into the sums.
            row_idx = row0 + jax.lax.broadcasted_iota(jnp.int32, d.shape, 0)
            accumulate(jnp.where(row_idx < total_rows, d, 0.0))
    else:
        accumulate(d)


def huber_loss(y_hat, y, delta=1.0):
    assert y_hat.shape == y.shape, "HuberLoss expects matching shapes"
    n_elem = y_hat.size
    assert n_elem % LANE == 0, "element count must be a multiple of 128"

    rows = n_elem // LANE
    # Contiguous reshape only — no pad, no dtype change in the wrapper.
    yh2 = jnp.reshape(y_hat, (rows, LANE))
    y2 = jnp.reshape(y, (rows, LANE))

    # Sublane multiple for the input dtype (8 f32, 16 bf16/f16, 32 int8/fp8).
    sublane_mult = max(8, 32 // jnp.dtype(yh2.dtype).itemsize)

    if rows <= 256:
        # Tiny input: one block covering everything.
        block_rows = _round_up(rows, sublane_mult)
    else:
        # >=4 grid steps so the BlockSpec pipeline can overlap DMA/compute,
        # capped so double-buffered inputs stay small vs v7x's 64 MiB VMEM.
        block_rows = min(MAX_BLOCK_ROWS,
                         _round_up(pl.cdiv(rows, 4), sublane_mult))

    n_blocks = pl.cdiv(rows, block_rows)
    # Shard the stream across 2 TensorCores (v7x) once each shard would still
    # have >=4 pipelined steps; on 1-TC chips the "parallel" axis just runs
    # sequentially and costs nothing.
    n_shards = 2 if n_blocks >= 8 else 1
    steps_per_shard = pl.cdiv(n_blocks, n_shards)

    needs_tail_mask = (rows % block_rows != 0) or \
                      (n_shards * steps_per_shard != n_blocks)

    def in_index_map(c, i):
        blk = c * steps_per_shard + i
        if n_shards * steps_per_shard != n_blocks:
            # Clamp fully-out-of-range steps onto the last real block; the
            # kernel's row-index mask zeroes their contribution.
            blk = jnp.minimum(blk, n_blocks - 1)
        return (blk, 0)

    kernel = functools.partial(
        _huber_partial_sums_kernel,
        total_rows=rows, block_rows=block_rows,
        steps_per_shard=steps_per_shard, needs_tail_mask=needs_tail_mask)

    itemsize = jnp.dtype(yh2.dtype).itemsize
    cost = pl.CostEstimate(
        flops=5 * n_elem,                       # sub, mul, add, abs, add
        transcendentals=0,
        bytes_accessed=2 * n_elem * itemsize + 2 * n_shards * 8 * LANE * 4)

    out_sq, out_abs = pl.pallas_call(
        kernel,
        out_shape=(
            jax.ShapeDtypeStruct((n_shards, 8, LANE), jnp.float32),
            jax.ShapeDtypeStruct((n_shards, 8, LANE), jnp.float32),
        ),
        grid_spec=pltpu.PrefetchScalarGridSpec(
            num_scalar_prefetch=0,
            grid=(n_shards, steps_per_shard),
            in_specs=[
                pl.BlockSpec((block_rows, LANE), in_index_map),
                pl.BlockSpec((block_rows, LANE), in_index_map),
            ],
            out_specs=(
                pl.BlockSpec((1, 8, LANE), lambda c, i: (c, 0, 0)),
                pl.BlockSpec((1, 8, LANE), lambda c, i: (c, 0, 0)),
            ),
        ),
        compiler_params=pltpu.CompilerParams(
            dimension_semantics=("parallel", "arbitrary"),
            # v5e's default scoped VMEM is 16 MiB; raise it so the pipeline
            # buffers aren't shrunk (40 MiB is still < v7x's 64 MiB physical).
            vmem_limit_bytes=40 * 1024 * 1024,
        ),
        cost_estimate=cost,
    )(yh2, y2)

    n = jnp.float32(n_elem)
    l2_loss = jnp.sum(out_sq) / n    # MSELoss (mean reduction)
    l1_loss = jnp.sum(out_abs) / n   # L1Loss  (mean reduction)
    # Module semantics: return l1_loss if l1_loss.item() < delta else l2_loss
    # (a single GLOBAL switch between the two mean losses — this is the spec'd
    # module, intentionally not torch.nn.HuberLoss's elementwise piecewise).
    return jnp.where(l1_loss < delta, l1_loss, l2_loss)


def _reference(y_hat, y, delta):
    d = y_hat.astype(jnp.float32) - y.astype(jnp.float32)
    l2 = jnp.mean(d * d)
    l1 = jnp.mean(jnp.abs(d))
    return jnp.where(l1 < delta, l1, l2)


if __name__ == "__main__":
    key = jax.random.PRNGKey(0)

    # Primary (module-sized) check: NCHW (2, 4, 16, 16).
    k1, k2, k3, k4, k5, k6 = jax.random.split(key, 6)
    shape = (2, 4, 16, 16)
    y_hat = jax.random.normal(k1, shape, dtype=jnp.float32)
    y = jax.random.normal(k2, shape, dtype=jnp.float32)
    out = jax.block_until_ready(huber_loss(y_hat, y, delta=1.0))
    ref = _reference(y_hat, y, 1.0)
    assert jnp.allclose(out, ref, rtol=1e-5, atol=1e-6), (out, ref)

    # Medium input: exercises the multi-step reduction axis (grid=(1, 4)).
    a = jax.random.normal(k3, (4, 16, 64, 64), dtype=jnp.float32)
    b = jax.random.normal(k4, (4, 16, 64, 64), dtype=jnp.float32)
    out_m = jax.block_until_ready(huber_loss(a, b, delta=1.0))
    ref_m = _reference(a, b, 1.0)
    assert jnp.allclose(out_m, ref_m, rtol=1e-4, atol=1e-6), (out_m, ref_m)

    # Ragged row count: exercises the gated tail-mask path.
    a = jax.random.normal(k5, (2056, 128), dtype=jnp.float32)
    b = jax.random.normal(k6, (2056, 128), dtype=jnp.float32)
    out_r = jax.block_until_ready(huber_loss(a, b, delta=1.0))
    ref_r = _reference(a, b, 1.0)
    assert jnp.allclose(out_r, ref_r, rtol=1e-4, atol=1e-6), (out_r, ref_r)

    print("KERNEL_OK")
</pallas_src>

<mosaic_0001>
module attributes {stable_mosaic.version = 11 : i64} {
  func.func @_huber_partial_sums_kernel(%arg0: i32, %arg1: i32, %arg2: memref<16x128xf32, #tpu.memory_space<vmem>>, %arg3: memref<16x128xf32, #tpu.memory_space<vmem>>, %arg4: memref<1x8x128xf32, #tpu.memory_space<vmem>>, %arg5: memref<1x8x128xf32, #tpu.memory_space<vmem>>) attributes {dimension_semantics = [#tpu.dimension_semantics<parallel>, #tpu.dimension_semantics<arbitrary>], iteration_bounds = array<i64: 1, 1>, scalar_prefetch = 0 : i64, scratch_operands = 0 : i64, tpu.core_type = #tpu.core_type<tc>, window_params = [{transform_indices = @transform_0, window_bounds = array<i64: 16, 128>}, {transform_indices = @transform_1, window_bounds = array<i64: 16, 128>}, {transform_indices = @transform_2, window_bounds = array<i64: 1, 8, 128>}, {transform_indices = @transform_3, window_bounds = array<i64: 1, 8, 128>}]} {
    %c0_i32 = arith.constant 0 : i32
    %0 = arith.cmpi eq, %arg1, %c0_i32 : i32
    %1 = arith.extui %0 : i1 to i32
    %c0_i32_0 = arith.constant 0 : i32
    %2 = arith.cmpi ne, %1, %c0_i32_0 : i32
    scf.if %2 {
      %cst_17 = arith.constant 0.000000e+00 : f32
      %23 = vector.broadcast %cst_17 : f32 to vector<1x8x128xf32>
      %c0_18 = arith.constant 0 : index
      %c0_19 = arith.constant 0 : index
      %c0_20 = arith.constant 0 : index
      %24 = vector.load %arg4[%c0_18, %c0_19, %c0_20] : memref<1x8x128xf32, #tpu.memory_space<vmem>>, vector<1x8x128xf32>
      tpu.vector_store %arg4[%c0_18, %c0_19, %c0_20], %23 {strides = array<i32>} : memref<1x8x128xf32, #tpu.memory_space<vmem>>, vector<1x8x128xf32>,
      %cst_21 = arith.constant 0.000000e+00 : f32
      %25 = vector.broadcast %cst_21 : f32 to vector<1x8x128xf32>
      %c0_22 = arith.constant 0 : index
      %c0_23 = arith.constant 0 : index
      %c0_24 = arith.constant 0 : index
      %26 = vector.load %arg5[%c0_22, %c0_23, %c0_24] : memref<1x8x128xf32, #tpu.memory_space<vmem>>, vector<1x8x128xf32>
      tpu.vector_store %arg5[%c0_22, %c0_23, %c0_24], %25 {strides = array<i32>} : memref<1x8x128xf32, #tpu.memory_space<vmem>>, vector<1x8x128xf32>,
    } else {
    }
    %c0 = arith.constant 0 : index
    %c0_1 = arith.constant 0 : index
    %3 = vector.load %arg2[%c0, %c0_1] : memref<16x128xf32, #tpu.memory_space<vmem>>, vector<16x128xf32>
    %c0_2 = arith.constant 0 : index
    %c0_3 = arith.constant 0 : index
    %4 = vector.load %arg3[%c0_2, %c0_3] : memref<16x128xf32, #tpu.memory_space<vmem>>, vector<16x128xf32>
    %5 = arith.subf %3, %4 : vector<16x128xf32>
    %6 = vector.shape_cast %5 : vector<16x128xf32> to vector<2x8x128xf32>
    %c0_4 = arith.constant 0 : index
    %c0_5 = arith.constant 0 : index
    %c0_6 = arith.constant 0 : index
    %7 = vector.load %arg4[%c0_4, %c0_5, %c0_6] : memref<1x8x128xf32, #tpu.memory_space<vmem>>, vector<1x8x128xf32>
    %8 = vector.shape_cast %7 : vector<1x8x128xf32> to vector<8x128xf32>
    %9 = arith.mulf %6, %6 : vector<2x8x128xf32>
    %cst = arith.constant dense<0.000000e+00> : vector<8x128xf32>
    %10 = vector.multi_reduction <add>, %9, %cst [0] : vector<2x8x128xf32> to vector<8x128xf32>
    %11 = arith.addf %8, %10 : vector<8x128xf32>
    %c0_7 = arith.constant 0 : index
    %c0_8 = arith.constant 0 : index
    %c0_9 = arith.constant 0 : index
    %12 = vector.load %arg4[%c0_7, %c0_8, %c0_9] : memref<1x8x128xf32, #tpu.memory_space<vmem>>, vector<1x8x128xf32>
    %13 = vector.shape_cast %12 : vector<1x8x128xf32> to vector<8x128xf32>
    %14 = vector.shape_cast %11 : vector<8x128xf32> to vector<1x8x128xf32>
    tpu.vector_store %arg4[%c0_7, %c0_8, %c0_9], %14 {strides = array<i32>} : memref<1x8x128xf32, #tpu.memory_space<vmem>>, vector<1x8x128xf32>,
    %c0_10 = arith.constant 0 : index
    %c0_11 = arith.constant 0 : index
    %c0_12 = arith.constant 0 : index
    %15 = vector.load %arg5[%c0_10, %c0_11, %c0_12] : memref<1x8x128xf32, #tpu.memory_space<vmem>>, vector<1x8x128xf32>
    %16 = vector.shape_cast %15 : vector<1x8x128xf32> to vector<8x128xf32>
    %17 = math.absf %6 : vector<2x8x128xf32>
    %cst_13 = arith.constant dense<0.000000e+00> : vector<8x128xf32>
    %18 = vector.multi_reduction <add>, %17, %cst_13 [0] : vector<2x8x128xf32> to vector<8x128xf32>
    %19 = arith.addf %16, %18 : vector<8x128xf32>
    %c0_14 = arith.constant 0 : index
    %c0_15 = arith.constant 0 : index
    %c0_16 = arith.constant 0 : index
    %20 = vector.load %arg5[%c0_14, %c0_15, %c0_16] : memref<1x8x128xf32, #tpu.memory_space<vmem>>, vector<1x8x128xf32>
    %21 = vector.shape_cast %20 : vector<1x8x128xf32> to vector<8x128xf32>
    %22 = vector.shape_cast %19 : vector<8x128xf32> to vector<1x8x128xf32>
    tpu.vector_store %arg5[%c0_14, %c0_15, %c0_16], %22 {strides = array<i32>} : memref<1x8x128xf32, #tpu.memory_space<vmem>>, vector<1x8x128xf32>,
    return
  }
  func.func @transform_0(%arg0: i32, %arg1: i32) -> (i32, i32) {
    %c1_i32 = arith.constant 1 : i32
    %0 = arith.muli %arg0, %c1_i32 : i32
    %1 = arith.addi %0, %arg1 : i32
    %c0_i32 = arith.constant 0 : i32
    %c0_i32_0 = arith.constant 0 : i32
    return %1, %c0_i32 : i32, i32
  }
  func.func @transform_1(%arg0: i32, %arg1: i32) -> (i32, i32) {
    %c1_i32 = arith.constant 1 : i32
    %0 = arith.muli %arg0, %c1_i32 : i32
    %1 = arith.addi %0, %arg1 : i32
    %c0_i32 = arith.constant 0 : i32
    %c0_i32_0 = arith.constant 0 : i32
    return %1, %c0_i32 : i32, i32
  }
  func.func @transform_2(%arg0: i32, %arg1: i32) -> (i32, i32, i32) {
    %c0_i32 = arith.constant 0 : i32
    %c0_i32_0 = arith.constant 0 : i32
    %c0_i32_1 = arith.constant 0 : i32
    return %arg0, %c0_i32, %c0_i32_0 : i32, i32, i32
  }
  func.func @transform_3(%arg0: i32, %arg1: i32) -> (i32, i32, i32) {
    %c0_i32 = arith.constant 0 : i32
    %c0_i32_0 = arith.constant 0 : i32
    %c0_i32_1 = arith.constant 0 : i32
    return %arg0, %c0_i32, %c0_i32_0 : i32, i32, i32
  }
}

</mosaic_0001>

<bundles_post_ra>
// kernel: tpu_custom_call.1
= control target key start
LH: loop header
LB: loop body
LE: loop exit
PB: predicated region body
PF: predicated region fallthrough
CT: control target
= control target key end

     0   :  { %9 = vsyncpa [#allocation3], 0  ;;  %s286_s0 = inlined_call_operand.hbm [shape: f32[16,128], index: 0, kind: input, shape index: {}]   ;;  %s287_s1 = inlined_call_operand.hbm [shape: f32[16,128], index: 1, kind: input, shape index: {}]   ;;  %s288_s2 = inlined_call_operand.hbm [shape: f32[1,8,128], index: 2, kind: output, shape index: {0}]   ;;  %s289_s3 = inlined_call_operand.hbm [shape: f32[1,8,128], index: 3, kind: output, shape index: {1}]  }
   0x1   :  { %10 = vsyncpa [#allocation6], 0 }
   0x2   :  { %11 = vsyncpa [#allocation4], 0 }
   0x3   :  { %12 = vsyncpa [#allocation9], 0  ;;  %s212_s12 = smov [#allocation2]   ;;  %s116_s16 = scalar_lea.hbm %s286_s0, 256 }
   0x4   :  { %s22_s13 = sshll.u32 %s212_s12, 4  ;;  %p117_p0 = scmp.ne.s32.totalorder %s286_s0, %s116_s16  ;;  %s23_s13 = int_to_ptr.vmem [resolvable:$true] %s22_s13 }
   0x5   :  { %p120_p1 = scmp.lt.u32.totalorder %s116_s16, %s286_s0 }
   0x7   :  { %p122_p2 = pnand %p120_p1, %p117_p0 }
   0x9   :  { %125 = shalt.err (!%p122_p2)
}
   0xa   :  { %s126_s21 = scalar_lea.vmem %s23_s13, 256  ;;  %p131_p4 = scmp.lt.s32.totalorder %s23_s13, %s23_s13 }
   0xb   :  { %p127_p3 = scmp.ne.s32.totalorder %s23_s13, %s126_s21  ;;  %p132_p5 = scmp.lt.s32.totalorder %s126_s21, %s126_s21 }
   0xd   :  { %p133_p6 = por %p132_p5, %p131_p4 }
   0xf   :  { %p134_p7 = pnand %p133_p6, %p127_p3 }
  0x11   :  { %137 = shalt.err (!%p134_p7)
}
  0x12   :  { %s213_s22 = smov 128   ;;  %s214_s23 = smov 8  }
  0x13   :  { %28 = dma.hbm_to_vmem [thread:$0]  %s286_s0, 256, %s23_s13, [#allocation3], %s213_s22, %s213_s22, %s214_s23  }
  0x14   :  { %s215_s26 = smov [#allocation5]   ;;  %s138_s30 = scalar_lea.hbm %s287_s1, 256 }
  0x15   :  { %s38_s27 = sshll.u32 %s215_s26, 4  ;;  %p139_p8 = scmp.ne.s32.totalorder %s287_s1, %s138_s30  ;;  %s39_s27 = int_to_ptr.vmem [resolvable:$true] %s38_s27 }
  0x16   :  { %p142_p9 = scmp.lt.u32.totalorder %s138_s30, %s287_s1 }
  0x18   :  { %p144_p10 = pnand %p142_p9, %p139_p8 }
  0x1a   :  { %147 = shalt.err (!%p144_p10)
}
  0x1b   :  { %s148_s8 = scalar_lea.vmem %s39_s27, 256  ;;  %p153_p12 = scmp.lt.s32.totalorder %s39_s27, %s39_s27 }
  0x1c   :  { %p149_p11 = scmp.ne.s32.totalorder %s39_s27, %s148_s8  ;;  %p154_p13 = scmp.lt.s32.totalorder %s148_s8, %s148_s8 }
  0x1e   :  { %p155_p0 = por %p154_p13, %p153_p12 }
  0x20   :  { %p156_p1 = pnand %p155_p0, %p149_p11 }
  0x22   :  { %159 = shalt.err (!%p156_p1)
}
  0x23   :  { %44 = dma.hbm_to_vmem [thread:$0]  %s287_s1, 256, %s39_s27, [#allocation6], %s213_s22, %s213_s22, %s214_s23  }
  0x24   :  { %204 = dma.done.wait [#allocation3], 256  }
  0x25   :  { %205 = vsyncadd [#allocation3], 4294967040 }
  0x26   :  { %206 = dma.done.wait [#allocation6], 256  }
  0x27   :  { %207 = vsyncadd [#allocation6], 4294967040  ;;  %v61_v0 = vld [vmem:[#allocation2] sm:$0xff]  ;;  %v62_v1 = vld [vmem:[#allocation2 + $0x8] sm:$0xff]  ;;  %s216_s10 = smov [#allocation7]   ;;  %s217_s12 = smov [#allocation8]  }
  0x28   :  { %v63_v2 = vld [vmem:[#allocation5] sm:$0xff]  ;;  %v64_v3 = vld [vmem:[#allocation5 + $0x8] sm:$0xff]  ;;  %s85_s11 = sshll.u32 %s216_s10, 4  ;;  %s95_s1 = sshll.u32 %s217_s12, 4  ;;  %s86_s11 = int_to_ptr.vmem [resolvable:$true] %s85_s11  ;;  %s96_s1 = int_to_ptr.vmem [resolvable:$true] %s95_s1 }
  0x29   :  { %v65_v4 = vsub.f32 %v61_v0, %v63_v2  ;;  %v66_v5 = vsub.f32 %v62_v1, %v64_v3  ;;  %s160_s13 = scalar_lea.vmem %s86_s11, 128  ;;  %p165_p3 = scmp.lt.s32.totalorder %s86_s11, %s86_s11 }
  0x2a   :  { %p161_p2 = scmp.ne.s32.totalorder %s86_s11, %s160_s13  ;;  %p166_p4 = scmp.lt.s32.totalorder %s160_s13, %s160_s13 }
  0x2b   :  { %v68_v6 = vmul.f32 %v65_v4, %v65_v4  ;;  %v74_v7 = vand.u32 2147483647, %v65_v4  ;;  %v69_v8 = vmul.f32 %v66_v5, %v66_v5  ;;  %v75_v9 = vand.u32 2147483647, %v66_v5 }
  0x2c   :  { %p167_p5 = por %p166_p4, %p165_p3 }
  0x2d   :  { %v70_v10 = vadd.f32 %v69_v8, %v68_v6  ;;  %v76_v11 = vadd.f32 %v75_v9, %v74_v7 }
  0x2e   :  { %p168_p6 = pnand %p167_p5, %p161_p2 }
  0x2f   :  { %72 = vst [vmem:[#allocation7] sm:$0xff] %v70_v10  ;;  %78 = vst [vmem:[#allocation8] sm:$0xff] %v76_v11 }
  0x30   :  { %171 = shalt.err (!%p168_p6)
}
  0x31   :  { %s172_s16 = scalar_lea.hbm %s288_s2, 128 }
  0x32   :  { %p173_p7 = scmp.ne.s32.totalorder %s288_s2, %s172_s16  ;;  %p176_p8 = scmp.lt.u32.totalorder %s172_s16, %s288_s2 }
  0x34   :  { %p178_p9 = pnand %p176_p8, %p173_p7 }
  0x36   :  { %181 = shalt.err (!%p178_p9)
}
  0x37   :  { %88 = dma.vmem_to_hbm [thread:$0]  %s86_s11, 128, %s288_s2, [#allocation4]  }
  0x38   :  { %s182_s23 = scalar_lea.vmem %s96_s1, 128  ;;  %p187_p11 = scmp.lt.s32.totalorder %s96_s1, %s96_s1 }
  0x39   :  { %p183_p10 = scmp.ne.s32.totalorder %s96_s1, %s182_s23  ;;  %p188_p12 = scmp.lt.s32.totalorder %s182_s23, %s182_s23 }
  0x3b   :  { %p189_p13 = por %p188_p12, %p187_p11 }
  0x3d   :  { %p190_p0 = pnand %p189_p13, %p183_p10 }
  0x3f   :  { %193 = shalt.err (!%p190_p0)
}
  0x40   :  { %s194_s26 = scalar_lea.hbm %s289_s3, 128 }
  0x41   :  { %p195_p1 = scmp.ne.s32.totalorder %s289_s3, %s194_s26  ;;  %p198_p2 = scmp.lt.u32.totalorder %s194_s26, %s289_s3 }
  0x43   :  { %p200_p3 = pnand %p198_p2, %p195_p1 }
  0x45   :  { %203 = shalt.err (!%p200_p3)
}
  0x46   :  { %98 = dma.vmem_to_hbm [thread:$0]  %s96_s1, 128, %s289_s3, [#allocation9]  }
  0x47   :  { %208 = dma.done.wait [#allocation4], 128  }
  0x48   :  { %209 = vsyncadd [#allocation4], 4294967168 }
  0x49   :  { %210 = dma.done.wait [#allocation9], 128  }
  0x4a   :  { %211 = vsyncadd [#allocation9], 4294967168 }
  0x4b   :  { %105 = vsyncpa [#allocation3], 1 }
  0x4c   :  { %106 = vsyncpa [#allocation6], 1 }
  0x4d   :  { %107 = vsyncpa [#allocation4], 1 }
  0x4e   :  { %108 = vsyncpa [#allocation9], 1 }

</bundles_post_ra>
